<compile_context>
chip_gen: v6e
topology: v6e:2x2x1
jax: 0.10.0
libtpu: 0.0.40
codegen_flags: <defaults>
</compile_context>

<pallas_src>
import jax
import jax.numpy as jnp
from jax import lax
from jax.experimental import pallas as pl
from jax.experimental.pallas import tpu as pltpu


# ----------------------- config (SparseCHMMConfig analogue) -----------------------
class Config:
    n_src = 4
    n_lbs = 5            # number of labels -> d_obs
    d_obs = 5
    n_ent = 2
    d_emb = 32
    d_hidden = 8
    diag_exp_t1 = 2.0
    diag_exp_t2 = 0.5
    nondiag_exp = 2.0
    nondiag_split_ratio = 1.0
    nondiag_split_decay = 0.5
    reliability_level = "label"
    disable_dirichlet = False
    dirichlet_conc_base = 1.0
    dirichlet_conc_max = 100.0


# ----------------------- sparse-CHMM math helpers (plain JAX glue) ----------------
# TODO(synk): exact formulas for prob_scaling / entity_emiss_* live in the
# sparse_chmm math module (not provided); these are piecewise-power
# reconstructions that preserve the row-stochastic structure the module builds.
def prob_scaling(x, r, e1, e2):
    lower = (x / r) ** e1 * r
    upper = 1.0 - ((1.0 - x) / (1.0 - r)) ** e2 * (1.0 - r)
    return jnp.where(x < r, lower, upper)


def entity_emiss_diag(x):
    return x


def entity_emiss_o(x, n_lbs, tp, exp_term):
    frac = jnp.where(
        x < tp,
        1.0 - (1.0 - 1.0 / (n_lbs - 1)) * (x / tp) ** exp_term,
        (1.0 / (n_lbs - 1)) * ((1.0 - x) / (1.0 - tp)) ** exp_term,
    )
    return (1.0 - x) * frac


def entity_emiss_nondiag(x, n_lbs, tp, exp_term):
    # TODO(synk): divides by (n_lbs - 2); reference math needed for n_lbs <= 2.
    o = entity_emiss_o(x, n_lbs, tp, exp_term)
    return (1.0 - x - o) / (n_lbs - 2)


# ----------------------- single fused Pallas kernel -------------------------------
def _make_fused_kernel(H, n_src, n_e_out, n_x):
    n_trans = H * H

    def kernel(x_ref, w_ref, b_ref, trans_ref, heads_ref):
        # One MXU push for transition + all three heads: bf16 inputs, f32 acc,
        # bias add and all VPU/EUP math in f32.
        z = jnp.dot(x_ref[...], w_ref[...],
                    preferred_element_type=jnp.float32) + b_ref[...]

        # --- transition: softmax over each trailing group of H logits -------
        tl = z[:, :n_trans]
        pieces = []
        for g in range(H):                      # static unrolled, VPU/XLU only
            sl = tl[:, g * H:(g + 1) * H]
            m = jnp.max(sl, axis=-1, keepdims=True)
            e = jnp.exp(sl - m)
            pieces.append(e / jnp.sum(e, axis=-1, keepdims=True))
        # single lane-dense store of the final row-major layout
        trans_ref[...] = jnp.concatenate(pieces, axis=-1)

        # --- heads: sigmoid on o2o (first n_src) and wxor (last n_x) lanes;
        #     the e2e slice stays raw (source-softmax happens in JAX glue) ----
        hz = z[:, n_trans:]
        lane = lax.broadcasted_iota(jnp.int32, hz.shape, 1)
        sig = jnp.logical_or(lane < n_src, lane >= n_src + n_e_out)
        heads_ref[...] = jnp.where(sig, jax.nn.sigmoid(hz), hz)

    return kernel


def _pick_block_m(M):
    # Only tile the token axis when it is large enough to matter (v7x 2-TC
    # split); otherwise use the whole axis as one block (grid degenerates to 1).
    if M <= 1024:
        return M
    for bm in (512, 256, 128):
        if M % bm == 0:
            return bm
    return M


def fused_neural_pallas(embs2d_bf16, w_all_bf16, b_all_f32,
                        H, n_src, n_e_out, n_x):
    M, D = embs2d_bf16.shape
    n_trans = H * H
    n_heads = n_src + n_e_out + n_x
    n_out = n_trans + n_heads
    block_m = _pick_block_m(M)
    grid = (M // block_m,)
    vmem = pltpu.MemorySpace.VMEM

    kernel = _make_fused_kernel(H, n_src, n_e_out, n_x)
    trans_flat, heads_all = pl.pallas_call(
        kernel,
        out_shape=(
            jax.ShapeDtypeStruct((M, n_trans), jnp.float32),
            jax.ShapeDtypeStruct((M, n_heads), jnp.float32),
        ),
        grid=grid,
        in_specs=[
            pl.BlockSpec((block_m, D), lambda i: (i, 0), memory_space=vmem),
            pl.BlockSpec((D, n_out), lambda i: (0, 0), memory_space=vmem),
            pl.BlockSpec((1, n_out), lambda i: (0, 0), memory_space=vmem),
        ],
        out_specs=(
            pl.BlockSpec((block_m, n_trans), lambda i: (i, 0), memory_space=vmem),
            pl.BlockSpec((block_m, n_heads), lambda i: (i, 0), memory_space=vmem),
        ),
        compiler_params=pltpu.CompilerParams(
            dimension_semantics=("parallel",),
            vmem_limit_bytes=16 * 1024 * 1024),
    )(embs2d_bf16, w_all_bf16, b_all_f32)
    return trans_flat, heads_all


# ----------------------- NeuralModule in JAX ---------------------------------------
class NeuralModuleJax:
    def __init__(self, cfg: Config, key):
        self.cfg = cfg
        D, H = cfg.d_emb, cfg.d_hidden
        n_src, n_lbs = cfg.n_src, cfg.n_lbs
        if cfg.reliability_level == "label":
            n_e_out = n_src * (n_lbs - 1)
        elif cfg.reliability_level == "entity":
            n_e_out = n_src * cfg.n_ent
        else:
            raise ValueError(cfg.reliability_level)
        n_x = n_src * (n_lbs - 1)
        self.n_e_out, self.n_x = n_e_out, n_x

        ks = jax.random.split(key, 8)

        def xavier(k, shape):
            fan_in, fan_out = shape
            bound = (6.0 / (fan_in + fan_out)) ** 0.5
            return jax.random.uniform(k, shape, jnp.float32, -bound, bound)

        def bias(k, fan_in, n):
            bound = 1.0 / (fan_in ** 0.5)
            return jax.random.uniform(k, (n,), jnp.float32, -bound, bound)

        # weights stored [in, out]; concatenated once into a single fused
        # (D, H*H + n_src + n_e_out + n_x) weight / bias for the one-matmul kernel.
        w_trans = xavier(ks[0], (D, H * H))
        b_trans = bias(ks[1], D, H * H)
        w_o = xavier(ks[2], (D, n_src))
        b_o = bias(ks[3], D, n_src)
        w_e = xavier(ks[4], (D, n_e_out))
        b_e = bias(ks[5], D, n_e_out)
        w_x = xavier(ks[6], (D, n_x))
        b_x = bias(ks[7], D, n_x)

        w_all = jnp.concatenate([w_trans, w_o, w_e, w_x], axis=1)
        self.w_all = w_all.astype(jnp.bfloat16)           # bf16 MXU inputs
        self.b_all = jnp.concatenate([b_trans, b_o, b_e, b_x]).reshape(1, -1)

        self.conc_base = cfg.dirichlet_conc_base
        self.conc_range = cfg.dirichlet_conc_max - cfg.dirichlet_conc_base
        self.wxor_lut = None  # [n_src, n_lbs-1, n_lbs-1], set externally

    def __call__(self, embs, add_wxor_lut=False, sample_emiss=True,
                 apply_ratio_decay=False, sample_key=None):
        cfg = self.cfg
        B, T, D = embs.shape
        H = cfg.d_hidden
        d = cfg.d_obs
        n_src = cfg.n_src

        # ---- one fused Pallas kernel: transition logits+softmax and all heads ----
        embs2d = embs.reshape(B * T, D).astype(jnp.bfloat16)
        trans_flat, heads_all = fused_neural_pallas(
            embs2d, self.w_all, self.b_all, H, n_src, self.n_e_out, self.n_x)

        # lane-dense slabs already in final row-major order: free reshapes.
        trans_probs = trans_flat.reshape(B, T, H, H)
        heads0 = heads_all.reshape(B, T, -1)[:, 0, :]      # first token per batch
        conc_o2o = heads0[:, :n_src]                        # sigmoid'ed in-kernel
        conc_e2e_flat = heads0[:, n_src:n_src + self.n_e_out]
        wxor_scale_flat = heads0[:, n_src + self.n_e_out:]  # sigmoid'ed in-kernel

        # ---- DirParamBase glue (tiny tensors; stays in XLA) ----
        conc_e2e = conc_e2e_flat.reshape(B, n_src, -1)
        conc_e2e_norm = jax.nn.softmax(conc_e2e, axis=-2)    # softmax over sources
        conc_e2e_scale = prob_scaling(conc_e2e_norm, 1.0 / n_src,
                                      cfg.diag_exp_t1, cfg.diag_exp_t2)
        if cfg.reliability_level == "label":
            conc_l2l = conc_e2e_scale                        # [B, n_src, d-1]
        elif cfg.reliability_level == "entity":
            conc_l2l = jnp.repeat(conc_e2e_scale, 2, axis=-1)
        else:
            raise ValueError(cfg.reliability_level)

        if not apply_ratio_decay:
            split_point = cfg.nondiag_split_ratio / d
        else:
            split_point = cfg.nondiag_split_ratio * cfg.nondiag_split_decay / d

        diag_v = entity_emiss_diag(conc_l2l)
        nondiag_v = jax.lax.stop_gradient(
            entity_emiss_nondiag(conc_l2l, d, split_point, cfg.nondiag_exp))
        l2o = entity_emiss_o(conc_l2l, d, split_point, cfg.nondiag_exp)

        # assemble diric_params [B, n_src, d, d] (pure indexing glue; every slot of
        # the PyTorch "zeros + 1e-9" tensor is overwritten in the reference forward)
        row0 = jnp.concatenate(
            [conc_o2o[..., None],
             jnp.broadcast_to(((1.0 - conc_o2o) / (d - 1))[..., None],
                              (B, n_src, d - 1))], axis=-1)   # [B, n_src, d]
        rows = jnp.arange(1, d)
        cols = jnp.arange(d)
        is_col0 = (cols == 0)[None, :]                        # [1, d]
        is_diag = (cols[None, :] == rows[:, None])            # [d-1, d]
        other = jnp.logical_and(~is_col0, ~is_diag)
        lower = (l2o[..., :, None] * is_col0
                 + diag_v[..., :, None] * is_diag
                 + nondiag_v[..., :, None] * other)           # [B, n_src, d-1, d]
        diric_params = jnp.concatenate([row0[:, :, None, :], lower], axis=2)

        if cfg.disable_dirichlet:
            return trans_probs, diric_params, (conc_o2o, conc_l2l)

        if add_wxor_lut:
            wxor_scale = wxor_scale_flat.reshape(B, n_src, -1)  # [B, n_src, d-1]
            wxor_potential = wxor_scale[..., None] * self.wxor_lut[None]
            scaled_wxor = jnp.swapaxes(wxor_potential, -1, -2)  # [B, n_src, d-1, d-1]
            wxor_mat = jnp.pad(scaled_wxor, ((0, 0), (0, 0), (1, 0), (1, 0)))
            diric_params = diric_params + wxor_mat
        else:
            scaled_wxor = None

        ranged = diric_params * self.conc_range + self.conc_base

        if sample_emiss:
            # TODO(synk): Dirichlet.rsample has no clean Pallas equivalent (and no
            # reparameterized gradient is wired up); plain jax.random.dirichlet.
            key = sample_key if sample_key is not None else jax.random.PRNGKey(0)
            emiss_probs = jax.random.dirichlet(key, ranged)
        else:
            # tiny tensor: let XLA fuse the sum/divide with the `ranged` arithmetic
            # (a Pallas launch here was pure overhead).
            emiss_probs = ranged / jnp.sum(ranged, axis=-1, keepdims=True)

        return trans_probs, emiss_probs, (conc_o2o, conc_l2l, scaled_wxor)


# ----------------------- demo --------------------------------------------------------
if __name__ == "__main__":
    cfg = Config()
    key = jax.random.PRNGKey(0)
    k_mod, k_emb, k_lut = jax.random.split(key, 3)

    module = NeuralModuleJax(cfg, k_mod)

    B, T = 2, 8
    embs = jax.random.normal(k_emb, (B, T, cfg.d_emb), dtype=jnp.float32)
    wxor_lut = jax.random.uniform(
        k_lut, (cfg.n_src, cfg.n_lbs - 1, cfg.n_lbs - 1), dtype=jnp.float32)
    module.wxor_lut = wxor_lut

    trans_probs, emiss_probs, (conc_o2o, conc_l2l, scaled_wxor) = module(
        embs, add_wxor_lut=True, sample_emiss=False, apply_ratio_decay=False)
    jax.block_until_ready((trans_probs, emiss_probs, conc_o2o, conc_l2l, scaled_wxor))

    assert trans_probs.shape == (B, T, cfg.d_hidden, cfg.d_hidden)
    assert emiss_probs.shape == (B, cfg.n_src, cfg.d_obs, cfg.d_obs)
    assert conc_o2o.shape == (B, cfg.n_src)
    assert conc_l2l.shape == (B, cfg.n_src, cfg.d_obs - 1)
    assert scaled_wxor.shape == (B, cfg.n_src, cfg.d_obs - 1, cfg.d_obs - 1)
    assert bool(jnp.allclose(trans_probs.sum(-1), 1.0, atol=1e-4))
    assert bool(jnp.allclose(emiss_probs.sum(-1), 1.0, atol=1e-4))

    print("KERNEL_OK")
</pallas_src>

<mosaic_0001>
module attributes {stable_mosaic.version = 11 : i64} {
  func.func @kernel(%arg0: i32, %arg1: memref<16x32xbf16, #tpu.memory_space<vmem>>, %arg2: memref<32x100xbf16, #tpu.memory_space<vmem>>, %arg3: memref<1x100xf32, #tpu.memory_space<vmem>>, %arg4: memref<16x64xf32, #tpu.memory_space<vmem>>, %arg5: memref<16x36xf32, #tpu.memory_space<vmem>>) attributes {dimension_semantics = [#tpu.dimension_semantics<parallel>], iteration_bounds = array<i64: 1>, scalar_prefetch = 0 : i64, scratch_operands = 0 : i64, tpu.core_type = #tpu.core_type<tc>, window_params = [{transform_indices = @transform_0, window_bounds = array<i64: 16, 32>}, {pipeline_mode = #tpu.pipeline_mode<synchronous>, transform_indices = @transform_1, window_bounds = array<i64: 32, 100>}, {pipeline_mode = #tpu.pipeline_mode<synchronous>, transform_indices = @transform_2, window_bounds = array<i64: 1, 100>}, {transform_indices = @transform_3, window_bounds = array<i64: 16, 64>}, {transform_indices = @transform_4, window_bounds = array<i64: 16, 36>}]} {
    %c0 = arith.constant 0 : index
    %c0_0 = arith.constant 0 : index
    %0 = vector.load %arg1[%c0, %c0_0] : memref<16x32xbf16, #tpu.memory_space<vmem>>, vector<16x32xbf16>
    %c0_1 = arith.constant 0 : index
    %c0_2 = arith.constant 0 : index
    %1 = vector.load %arg2[%c0_1, %c0_2] : memref<32x100xbf16, #tpu.memory_space<vmem>>, vector<32x100xbf16>
    %cst = arith.constant dense<0.000000e+00> : vector<16x100xf32>
    %2 = tpu.matmul %0, %1, %cst {dimension_numbers = #tpu.dot_dimension_numbers<[1], [0], [0], [1], [0, 0, 1, 1], [], []>} : vector<16x32xbf16>, vector<32x100xbf16>, vector<16x100xf32> -> vector<16x100xf32>
    %c0_3 = arith.constant 0 : index
    %c0_4 = arith.constant 0 : index
    %3 = vector.load %arg3[%c0_3, %c0_4] : memref<1x100xf32, #tpu.memory_space<vmem>>, vector<1x100xf32>
    %4 = vector.broadcast %3 : vector<1x100xf32> to vector<16x100xf32>
    %5 = arith.addf %2, %4 : vector<16x100xf32>
    %6 = vector.extract_strided_slice %5 {offsets = [0, 0], sizes = [16, 64], strides = [1, 1]} : vector<16x100xf32> to vector<16x64xf32>
    %7 = vector.extract_strided_slice %6 {offsets = [0, 0], sizes = [16, 8], strides = [1, 1]} : vector<16x64xf32> to vector<16x8xf32>
    %cst_5 = arith.constant dense<0xFF800000> : vector<16xf32>
    %8 = vector.multi_reduction <maximumf>, %7, %cst_5 [1] : vector<16x8xf32> to vector<16xf32>
    %9 = vector.shape_cast %8 : vector<16xf32> to vector<16x1xf32>
    %10 = vector.broadcast %9 : vector<16x1xf32> to vector<16x8xf32>
    %11 = arith.subf %7, %10 : vector<16x8xf32>
    %12 = math.exp %11 : vector<16x8xf32>
    %cst_6 = arith.constant dense<0.000000e+00> : vector<16xf32>
    %13 = vector.multi_reduction <add>, %12, %cst_6 [1] : vector<16x8xf32> to vector<16xf32>
    %14 = vector.shape_cast %13 : vector<16xf32> to vector<16x1xf32>
    %15 = vector.broadcast %14 : vector<16x1xf32> to vector<16x8xf32>
    %16 = arith.divf %12, %15 : vector<16x8xf32>
    %17 = vector.extract_strided_slice %6 {offsets = [0, 8], sizes = [16, 8], strides = [1, 1]} : vector<16x64xf32> to vector<16x8xf32>
    %cst_7 = arith.constant dense<0xFF800000> : vector<16xf32>
    %18 = vector.multi_reduction <maximumf>, %17, %cst_7 [1] : vector<16x8xf32> to vector<16xf32>
    %19 = vector.shape_cast %18 : vector<16xf32> to vector<16x1xf32>
    %20 = vector.broadcast %19 : vector<16x1xf32> to vector<16x8xf32>
    %21 = arith.subf %17, %20 : vector<16x8xf32>
    %22 = math.exp %21 : vector<16x8xf32>
    %cst_8 = arith.constant dense<0.000000e+00> : vector<16xf32>
    %23 = vector.multi_reduction <add>, %22, %cst_8 [1] : vector<16x8xf32> to vector<16xf32>
    %24 = vector.shape_cast %23 : vector<16xf32> to vector<16x1xf32>
    %25 = vector.broadcast %24 : vector<16x1xf32> to vector<16x8xf32>
    %26 = arith.divf %22, %25 : vector<16x8xf32>
    %27 = vector.extract_strided_slice %6 {offsets = [0, 16], sizes = [16, 8], strides = [1, 1]} : vector<16x64xf32> to vector<16x8xf32>
    %cst_9 = arith.constant dense<0xFF800000> : vector<16xf32>
    %28 = vector.multi_reduction <maximumf>, %27, %cst_9 [1] : vector<16x8xf32> to vector<16xf32>
    %29 = vector.shape_cast %28 : vector<16xf32> to vector<16x1xf32>
    %30 = vector.broadcast %29 : vector<16x1xf32> to vector<16x8xf32>
    %31 = arith.subf %27, %30 : vector<16x8xf32>
    %32 = math.exp %31 : vector<16x8xf32>
    %cst_10 = arith.constant dense<0.000000e+00> : vector<16xf32>
    %33 = vector.multi_reduction <add>, %32, %cst_10 [1] : vector<16x8xf32> to vector<16xf32>
    %34 = vector.shape_cast %33 : vector<16xf32> to vector<16x1xf32>
    %35 = vector.broadcast %34 : vector<16x1xf32> to vector<16x8xf32>
    %36 = arith.divf %32, %35 : vector<16x8xf32>
    %37 = vector.extract_strided_slice %6 {offsets = [0, 24], sizes = [16, 8], strides = [1, 1]} : vector<16x64xf32> to vector<16x8xf32>
    %cst_11 = arith.constant dense<0xFF800000> : vector<16xf32>
    %38 = vector.multi_reduction <maximumf>, %37, %cst_11 [1] : vector<16x8xf32> to vector<16xf32>
    %39 = vector.shape_cast %38 : vector<16xf32> to vector<16x1xf32>
    %40 = vector.broadcast %39 : vector<16x1xf32> to vector<16x8xf32>
    %41 = arith.subf %37, %40 : vector<16x8xf32>
    %42 = math.exp %41 : vector<16x8xf32>
    %cst_12 = arith.constant dense<0.000000e+00> : vector<16xf32>
    %43 = vector.multi_reduction <add>, %42, %cst_12 [1] : vector<16x8xf32> to vector<16xf32>
    %44 = vector.shape_cast %43 : vector<16xf32> to vector<16x1xf32>
    %45 = vector.broadcast %44 : vector<16x1xf32> to vector<16x8xf32>
    %46 = arith.divf %42, %45 : vector<16x8xf32>
    %47 = vector.extract_strided_slice %6 {offsets = [0, 32], sizes = [16, 8], strides = [1, 1]} : vector<16x64xf32> to vector<16x8xf32>
    %cst_13 = arith.constant dense<0xFF800000> : vector<16xf32>
    %48 = vector.multi_reduction <maximumf>, %47, %cst_13 [1] : vector<16x8xf32> to vector<16xf32>
    %49 = vector.shape_cast %48 : vector<16xf32> to vector<16x1xf32>
    %50 = vector.broadcast %49 : vector<16x1xf32> to vector<16x8xf32>
    %51 = arith.subf %47, %50 : vector<16x8xf32>
    %52 = math.exp %51 : vector<16x8xf32>
    %cst_14 = arith.constant dense<0.000000e+00> : vector<16xf32>
    %53 = vector.multi_reduction <add>, %52, %cst_14 [1] : vector<16x8xf32> to vector<16xf32>
    %54 = vector.shape_cast %53 : vector<16xf32> to vector<16x1xf32>
    %55 = vector.broadcast %54 : vector<16x1xf32> to vector<16x8xf32>
    %56 = arith.divf %52, %55 : vector<16x8xf32>
    %57 = vector.extract_strided_slice %6 {offsets = [0, 40], sizes = [16, 8], strides = [1, 1]} : vector<16x64xf32> to vector<16x8xf32>
    %cst_15 = arith.constant dense<0xFF800000> : vector<16xf32>
    %58 = vector.multi_reduction <maximumf>, %57, %cst_15 [1] : vector<16x8xf32> to vector<16xf32>
    %59 = vector.shape_cast %58 : vector<16xf32> to vector<16x1xf32>
    %60 = vector.broadcast %59 : vector<16x1xf32> to vector<16x8xf32>
    %61 = arith.subf %57, %60 : vector<16x8xf32>
    %62 = math.exp %61 : vector<16x8xf32>
    %cst_16 = arith.constant dense<0.000000e+00> : vector<16xf32>
    %63 = vector.multi_reduction <add>, %62, %cst_16 [1] : vector<16x8xf32> to vector<16xf32>
    %64 = vector.shape_cast %63 : vector<16xf32> to vector<16x1xf32>
    %65 = vector.broadcast %64 : vector<16x1xf32> to vector<16x8xf32>
    %66 = arith.divf %62, %65 : vector<16x8xf32>
    %67 = vector.extract_strided_slice %6 {offsets = [0, 48], sizes = [16, 8], strides = [1, 1]} : vector<16x64xf32> to vector<16x8xf32>
    %cst_17 = arith.constant dense<0xFF800000> : vector<16xf32>
    %68 = vector.multi_reduction <maximumf>, %67, %cst_17 [1] : vector<16x8xf32> to vector<16xf32>
    %69 = vector.shape_cast %68 : vector<16xf32> to vector<16x1xf32>
    %70 = vector.broadcast %69 : vector<16x1xf32> to vector<16x8xf32>
    %71 = arith.subf %67, %70 : vector<16x8xf32>
    %72 = math.exp %71 : vector<16x8xf32>
    %cst_18 = arith.constant dense<0.000000e+00> : vector<16xf32>
    %73 = vector.multi_reduction <add>, %72, %cst_18 [1] : vector<16x8xf32> to vector<16xf32>
    %74 = vector.shape_cast %73 : vector<16xf32> to vector<16x1xf32>
    %75 = vector.broadcast %74 : vector<16x1xf32> to vector<16x8xf32>
    %76 = arith.divf %72, %75 : vector<16x8xf32>
    %77 = vector.extract_strided_slice %6 {offsets = [0, 56], sizes = [16, 8], strides = [1, 1]} : vector<16x64xf32> to vector<16x8xf32>
    %cst_19 = arith.constant dense<0xFF800000> : vector<16xf32>
    %78 = vector.multi_reduction <maximumf>, %77, %cst_19 [1] : vector<16x8xf32> to vector<16xf32>
    %79 = vector.shape_cast %78 : vector<16xf32> to vector<16x1xf32>
    %80 = vector.broadcast %79 : vector<16x1xf32> to vector<16x8xf32>
    %81 = arith.subf %77, %80 : vector<16x8xf32>
    %82 = math.exp %81 : vector<16x8xf32>
    %cst_20 = arith.constant dense<0.000000e+00> : vector<16xf32>
    %83 = vector.multi_reduction <add>, %82, %cst_20 [1] : vector<16x8xf32> to vector<16xf32>
    %84 = vector.shape_cast %83 : vector<16xf32> to vector<16x1xf32>
    %85 = vector.broadcast %84 : vector<16x1xf32> to vector<16x8xf32>
    %86 = arith.divf %82, %85 : vector<16x8xf32>
    %87 = tpu.concatenate %16, %26, %36, %46, %56, %66, %76, %86 in 1 : vector<16x8xf32>, vector<16x8xf32>, vector<16x8xf32>, vector<16x8xf32>, vector<16x8xf32>, vector<16x8xf32>, vector<16x8xf32>, vector<16x8xf32> -> vector<16x64xf32>
    %c0_21 = arith.constant 0 : index
    %c0_22 = arith.constant 0 : index
    %88 = vector.load %arg4[%c0_21, %c0_22] : memref<16x64xf32, #tpu.memory_space<vmem>>, vector<16x64xf32>
    tpu.vector_store %arg4[%c0_21, %c0_22], %87 {strides = array<i32>} : memref<16x64xf32, #tpu.memory_space<vmem>>, vector<16x64xf32>,
    %89 = vector.extract_strided_slice %5 {offsets = [0, 64], sizes = [16, 36], strides = [1, 1]} : vector<16x100xf32> to vector<16x36xf32>
    %90 = tpu.iota {dimensions = array<i32: 1>} : vector<16x36xi32>
    %c4_i32 = arith.constant 4 : i32
    %91 = vector.broadcast %c4_i32 : i32 to vector<16x36xi32>
    %92 = arith.cmpi slt, %90, %91 : vector<16x36xi32>
    %c20_i32 = arith.constant 20 : i32
    %93 = vector.broadcast %c20_i32 : i32 to vector<16x36xi32>
    %94 = arith.cmpi sge, %90, %93 : vector<16x36xi32>
    %95 = arith.ori %92, %94 : vector<16x36xi1>
    %96 = arith.negf %89 : vector<16x36xf32>
    %97 = math.exp %96 : vector<16x36xf32>
    %cst_23 = arith.constant 1.000000e+00 : f32
    %98 = vector.broadcast %cst_23 : f32 to vector<16x36xf32>
    %99 = arith.addf %98, %97 : vector<16x36xf32>
    %100 = arith.divf %98, %99 : vector<16x36xf32>
    %101 = arith.select %95, %100, %89 : vector<16x36xi1>, vector<16x36xf32>
    %c0_24 = arith.constant 0 : index
    %c0_25 = arith.constant 0 : index
    %102 = vector.load %arg5[%c0_24, %c0_25] : memref<16x36xf32, #tpu.memory_space<vmem>>, vector<16x36xf32>
    tpu.vector_store %arg5[%c0_24, %c0_25], %101 {strides = array<i32>} : memref<16x36xf32, #tpu.memory_space<vmem>>, vector<16x36xf32>,
    return
  }
  func.func @transform_0(%arg0: i32) -> (i32, i32) {
    %c0_i32 = arith.constant 0 : i32
    %c0_i32_0 = arith.constant 0 : i32
    return %arg0, %c0_i32 : i32, i32
  }
  func.func @transform_1(%arg0: i32) -> (i32, i32) {
    %c0_i32 = arith.constant 0 : i32
    %c0_i32_0 = arith.constant 0 : i32
    %c0_i32_1 = arith.constant 0 : i32
    return %c0_i32, %c0_i32_0 : i32, i32
  }
  func.func @transform_2(%arg0: i32) -> (i32, i32) {
    %c0_i32 = arith.constant 0 : i32
    %c0_i32_0 = arith.constant 0 : i32
    %c0_i32_1 = arith.constant 0 : i32
    return %c0_i32, %c0_i32_0 : i32, i32
  }
  func.func @transform_3(%arg0: i32) -> (i32, i32) {
    %c0_i32 = arith.constant 0 : i32
    %c0_i32_0 = arith.constant 0 : i32
    return %arg0, %c0_i32 : i32, i32
  }
  func.func @transform_4(%arg0: i32) -> (i32, i32) {
    %c0_i32 = arith.constant 0 : i32
    %c0_i32_0 = arith.constant 0 : i32
    return %arg0, %c0_i32 : i32, i32
  }
}

</mosaic_0001>

<bundles_post_ra>
// kernel: tpu_custom_call.1
= control target key start
LH: loop header
LB: loop body
LE: loop exit
PB: predicated region body
PF: predicated region fallthrough
CT: control target
= control target key end

     0   :  { %10 = vsyncpa [#allocation3], 0  ;;  %s891_s0 = inlined_call_operand.hbm [shape: bf16[16,32], index: 0, kind: input, shape index: {}]   ;;  %s892_s1 = inlined_call_operand.hbm [shape: bf16[32,100], index: 1, kind: input, shape index: {}]   ;;  %s893_s2 = inlined_call_operand.vmem [shape: f32[1,100], index: 2, kind: input, shape index: {}]   ;;  %s894_s3 = inlined_call_operand.hbm [shape: f32[16,64], index: 3, kind: output, shape index: {0}]   ;;  %s895_s4 = inlined_call_operand.hbm [shape: f32[16,36], index: 4, kind: output, shape index: {1}]  }
   0x1   :  { %11 = vsyncpa [#allocation6], 0 }
   0x2   :  { %12 = vsyncpa [#allocation4], 0 }
   0x3   :  { %13 = vsyncpa [#allocation9], 0  ;;  %s654_s15 = smov [#allocation2]  }
   0x4   :  { %s19_s16 = sshll.u32 %s654_s15, 4  ;;  %s20_s16 = int_to_ptr.vmem [resolvable:$true] %s19_s16 }
   0x5   :  { %s574_s17 = scalar_lea.vmem %s20_s16, 128  ;;  %p579_p1 = scmp.lt.s32.totalorder %s20_s16, %s20_s16 }
   0x6   :  { %p575_p0 = scmp.ne.s32.totalorder %s20_s16, %s574_s17  ;;  %p580_p2 = scmp.lt.s32.totalorder %s574_s17, %s574_s17 }
   0x8   :  { %p581_p3 = por %p580_p2, %p579_p1 }
   0xa   :  { %p582_p4 = pnand %p581_p3, %p575_p0 }
   0xc   :  { %585 = shalt.err (!%p582_p4)
}
   0xd   :  { %s655_s18 = smov 64   ;;  %s656_s19 = smov 4  }
   0xe   :  { %25 = dma.hbm_to_vmem [thread:$0]  %s891_s0, 128, %s20_s16, [#allocation3], %s655_s18, %s655_s18, %s656_s19  }
   0xf   :  { %s657_s22 = smov [#allocation5]  }
  0x10   :  { %s31_s23 = sshll.u32 %s657_s22, 4  ;;  %s32_s23 = int_to_ptr.vmem [resolvable:$true] %s31_s23 }
  0x11   :  { %s594_s24 = scalar_lea.vmem %s32_s23, 256  ;;  %p599_p6 = scmp.lt.s32.totalorder %s32_s23, %s32_s23 }
  0x12   :  { %p595_p5 = scmp.ne.s32.totalorder %s32_s23, %s594_s24  ;;  %p600_p7 = scmp.lt.s32.totalorder %s594_s24, %s594_s24 }
  0x14   :  { %p601_p8 = por %p600_p7, %p599_p6 }
  0x16   :  { %p602_p9 = pnand %p601_p8, %p595_p5 }
  0x18   :  { %605 = shalt.err (!%p602_p9)
}
  0x19   :  { %37 = dma.hbm_to_vmem [thread:$0]  %s892_s1, 256, %s32_s23, [#allocation6], %s655_s18, %s655_s18, %s656_s19  }
  0x1a   :  { %646 = dma.done.wait [#allocation3], 128  }
  0x1b   :  { %647 = vsyncadd [#allocation3], 4294967168 }
  0x1c   :  { %648 = dma.done.wait [#allocation6], 256  }
  0x1d   :  { %649 = vsyncadd [#allocation6], 4294967040  ;;  %v658_v0 = vmov 0.0   ;;  %vm659_vm0 = vmmov 0   ;;  %v491_v1 = vld [vmem:[#allocation5 + $0x8] sm:$0xff]   ;;  %v492_v2 = vld [vmem:[#allocation5] sm:$0xff]  }
  0x1e   :  { %466 = vmatprep.subr.bf16.mxu0 %v658_v0  ;;  %470 = vmatprep.mubr.msk.bf16.mxu0 %vm659_vm0, %v658_v0  ;;  %v493_v3 = vld [vmem:[#allocation2] sm:$0xff]   ;;  %vm77_vm1 = vcmask 261120   ;;  %vm207_vm2 = vcmask 261312   ;;  %vm122_vm3 = vcmask 64512   ;;  %vm238_vm4 = vcmask 326912   ;;  %s660_s1 = smov 120  }
  0x1f   :  { %467 = vmatpush3.bf16.msra.mxu0 %v491_v1  ;;  %v456_v4 = vld [vmem:[%s893_s2] ss:$0 sm:$0xff]  ;;  %vm145_vm5 = vcmask 130112   ;;  %vm269_vm6 = vcmask 392512   ;;  %vm176_vm7 = vcmask 195712   ;;  %vm300_vm8 = vcmask 458112  }
  0x20   :  { %468 = vmatprep.subr.bf16.mxu0 %v658_v0  ;;  %vm331_vm9 = vcmask 523712   ;;  %s661_s2 = smov 112   ;;  %s662_s28 = smov 104   ;;  %vm419_vm13 = vcmask 293888   ;;  %vm364_vm14 = vcmask 130048   ;;  %vm367_vm15 = vcmask 195584  }
  0x21   :  { %s663_s29 = smov 96   ;;  %s664_s30 = smov 88   ;;  %vm372_vm0 = vcmask 326656  }
  0x22   :  { %s665_s5 = smov 80   ;;  %s666_s6 = smov 72  }
  0x23   :  { %469 = vmatpush3.bf16.msra.mxu0 %v492_v2  ;;  %s667_s7 = smov [#allocation8]  }
  0x24   :  { %s439_s8 = sshll.u32 %s667_s7, 4  ;;  %s440_s8 = int_to_ptr.vmem [resolvable:$true] %s439_s8 }
  0x25   :  { %s606_s9 = scalar_lea.vmem %s440_s8, 256  ;;  %p611_p11 = scmp.lt.s32.totalorder %s440_s8, %s440_s8 }
  0x26   :  { %471 = vmatmul.mubr.msk.bf16.vlgmr.msra.gmra.mxu0 %vm77_vm1, %v493_v3  ;;  %p607_p10 = scmp.ne.s32.totalorder %s440_s8, %s606_s9  ;;  %p612_p12 = scmp.lt.s32.totalorder %s606_s9, %s606_s9 }
  0x28   :  { %p613_p13 = por %p612_p12, %p611_p11 }
  0x2a   :  { %p614_p0 = pnand %p613_p13, %p607_p10 }
  0xe6   :  { %v115_v5 = vpop.f32.mrf.mxu0 }
  0xe7   :  { %v710_v6 = vadd.f32 %v456_v4, %v115_v5 }
  0xe8   :  { %v472_v7 = vpop.f32.mrf.mxu0 }
  0xe9   :  { %v208_v8 = vsel %vm207_vm2, %v710_v6, -inf  ;;  %v123_v9 = vsel %vm122_vm3, %v710_v6, -inf  ;;  %v239_v12 = vsel %vm238_vm4, %v710_v6, -inf  ;;  %v146_v13 = vsel %vm145_vm5, %v710_v6, -inf }
  0xea   :  { %209 = vmax.xlane.f32.xlu1 %v208_v8  ;;  %124 = vmax.xlane.f32.xlu0 %v123_v9  ;;  %v118_v10 = vpop.f32.mrf.mxu0  ;;  %v270_v15 = vsel %vm269_vm6, %v710_v6, -inf  ;;  %v177_v16 = vsel %vm176_vm7, %v710_v6, -inf  ;;  %v301_v17 = vsel %vm300_vm8, %v710_v6, -inf  ;;  %v332_v19 = vsel %vm331_vm9, %v710_v6, -inf }
  0xeb   :  { %v720_v14 = vadd.f32 %v456_v4, %v118_v10 }
  0xec   :  { %v473_v11 = vpop.f32.mrf.mxu0 }
  0xed   :  { %v126_v18 = vsel %vm122_vm3, %v720_v14, -inf  ;;  %v180_v20 = vsel %vm176_vm7, %v720_v14, -inf  ;;  %v149_v21 = vsel %vm145_vm5, %v720_v14, -inf  ;;  %v211_v22 = vsel %vm207_vm2, %v720_v14, -inf }
  0xee   :  { %240 = vmax.xlane.f32.xlu1 %v239_v12  ;;  %147 = vmax.xlane.f32.xlu0 %v146_v13  ;;  %v242_v23 = vsel %vm238_vm4, %v720_v14, -inf  ;;  %v273_v24 = vsel %vm269_vm6, %v720_v14, -inf  ;;  %v304_v25 = vsel %vm300_vm8, %v720_v14, -inf  ;;  %v335_v26 = vsel %vm331_vm9, %v720_v14, -inf }
  0xef   :  { %vm375_vm2 = vcmask 392192   ;;  %vm378_vm4 = vcmask 457728  }
  0xf2   :  { %271 = vmax.xlane.f32.xlu1 %v270_v15  ;;  %178 = vmax.xlane.f32.xlu0 %v177_v16 }
  0xf6   :  { %302 = vmax.xlane.f32.xlu1 %v301_v17  ;;  %127 = vmax.xlane.f32.xlu0 %v126_v18 }
  0xfa   :  { %333 = vmax.xlane.f32.xlu1 %v332_v19  ;;  %181 = vmax.xlane.f32.xlu0 %v180_v20 }
  0xfe   :  { %150 = vmax.xlane.f32.xlu1 %v149_v21  ;;  %212 = vmax.xlane.f32.xlu0 %v211_v22 }
 0x102   :  { %243 = vmax.xlane.f32.xlu0 %v242_v23 }
 0x106   :  { %274 = vmax.xlane.f32.xlu0 %v273_v24 }
 0x10a   :  { %305 = vmax.xlane.f32.xlu0 %v304_v25 }
 0x10e   :  { %336 = vmax.xlane.f32.xlu0 %v335_v26 }
 0x173   :  { %v210_v27 = vpop.xlane.xlu1 %209  ;;  %v125_v28 = vpop.xlane.xlu0 %124 }
 0x174   :  { %v129_v29 = vsub.f32 %v710_v6, %v125_v28  ;;  %v214_v38 = vsub.f32 %v710_v6, %v210_v27 }
 0x176   :  { %v131_v30 = vmul.f32 1.442695, %v129_v29  ;;  %v216_v42 = vmul.f32 1.442695, %v214_v38  ;;  %v462_v38 = vmul.f32 -1.442695, %v720_v14 }
 0x177   :  { %v241_v31 = vpop.xlane.xlu1 %240  ;;  %v148_v32 = vpop.xlane.xlu0 %147 }
 0x178   :  { %v152_v33 = vsub.f32 %v710_v6, %v148_v32  ;;  %494 = vpow2.f32 %v131_v30  ;;  %v245_v43 = vsub.f32 %v710_v6, %v241_v31 }
 0x17a   :  { %v154_v34 = vmul.f32 1.442695, %v152_v33  ;;  %v247_v46 = vmul.f32 1.442695, %v245_v43 }
 0x17b   :  { %v272_v35 = vpop.xlane.xlu1 %271  ;;  %v179_v36 = vpop.xlane.xlu0 %178 }
 0x17c   :  { %v183_v37 = vsub.f32 %v710_v6, %v179_v36  ;;  %496 = vpow2.f32 %v154_v34  ;;  %v276_v47 = vsub.f32 %v710_v6, %v272_v35 }
 0x17e   :  { %v185_v39 = vmul.f32 1.442695, %v183_v37  ;;  %v278_v54 = vmul.f32 1.442695, %v276_v47 }
 0x17f   :  { %v303_v40 = vpop.xlane.xlu1 %302  ;;  %v746_v41 = vpop.xlane.xlu0 %127 }
 0x180   :  { %498 = vpow2.f32 %v185_v39  ;;  %v307_v55 = vsub.f32 %v710_v6, %v303_v40  ;;  %v130_v25 = vsub.f32 %v720_v14, %v746_v41  ;;  %v461_v39 = vmul.f32 -1.442695, %v710_v6 }
 0x181   :  { %500 = vpow2.f32 %v216_v42 }
 0x182   :  { %502 = vpow2.f32 %v247_v46  ;;  %v309_v61 = vmul.f32 1.442695, %v307_v55  ;;  %v133_v27 = vmul.f32 1.442695, %v130_v25  ;;  %v384_v25 = vlaneseq }
 0x183   :  { %v334_v44 = vpop.xlane.xlu1 %333  ;;  %v182_v45 = vpop.xlane.xlu0 %181 }
 0x184   :  { %v184_v52 = vsub.f32 %v720_v14, %v182_v45  ;;  %v338_v62 = vsub.f32 %v710_v6, %v334_v44 }
 0x185   :  { %v750_v48 = vpop.eup %494 }
 0x186   :  { %v135_v49 = vsel %vm122_vm3, %v750_v48, 0.0  ;;  %v187_v59 = vmul.f32 1.442695, %v184_v52  ;;  %v340_v2 = vmul.f32 1.442695, %v338_v62 }
 0x187   :  { %v151_v50 = vpop.xlane.xlu1 %150  ;;  %v213_v51 = vpop.xlane.xlu0 %212  ;;  %136 = vadd.xlane.f32.xlu1 %v135_v49 }
 0x188   :  { %v153_v53 = vsub.f32 %v720_v14, %v151_v50  ;;  %v215_v60 = vsub.f32 %v720_v14, %v213_v51 }
 0x189   :  { %v757_v56 = vpop.eup %496 }
 0x18a   :  { %v156_v57 = vmul.f32 1.442695, %v153_v53  ;;  %160 = vrot.lane.b32.xlu0 %v757_v56, %s660_s1  ;;  %v218_v1 = vmul.f32 1.442695, %v215_v60 }
 0x18b   :  { %v244_v58 = vpop.xlane.xlu0 %243 }
 0x18c   :  { %504 = vpow2.f32 %v156_v57  ;;  %v246_v3 = vsub.f32 %v720_v14, %v244_v58 }
 0x18d   :  { %506 = vpow2.f32 %v278_v54  ;;  %v763_v63 = vpop.eup %498 }
 0x18e   :  { %191 = vrot.lane.b32.xlu0 %v763_v63, %s661_s2  ;;  %508 = vpow2.f32 %v187_v59  ;;  %v768_v4 = vpop.eup %500  ;;  %v249_v7 = vmul.f32 1.442695, %v246_v3 }
 0x18f   :  { %v275_v0 = vpop.xlane.xlu0 %274  ;;  %510 = vpow2.f32 %v309_v61  ;;  %v773_v9 = vpop.eup %502 }
 0x190   :  { %512 = vpow2.f32 %v218_v1  ;;  %v277_v8 = vsub.f32 %v720_v14, %v275_v0 }
 0x191   :  { %514 = vpow2.f32 %v340_v2 }
 0x192   :  { %222 = vrot.lane.b32.xlu0 %v768_v4, %s662_s28  ;;  %516 = vpow2.f32 %v249_v7  ;;  %v280_v11 = vmul.f32 1.442695, %v277_v8 }
 0x193   :  { %v306_v5 = vpop.xlane.xlu0 %305 }
 0x194   :  { %v308_v12 = vsub.f32 %v720_v14, %v306_v5  ;;  %518 = vpow2.f32 %v280_v11 }
 0x196   :  { %253 = vrot.lane.b32.xlu0 %v773_v9, %s663_s29  ;;  %v311_v17 = vmul.f32 1.442695, %v308_v12 }
 0x197   :  { %v337_v15 = vpop.xlane.xlu0 %336 }
 0x198   :  { %v339_v18 = vsub.f32 %v720_v14, %v337_v15  ;;  %520 = vpow2.f32 %v311_v17 }
 0x199   :  { %v776_v10 = vpop.eup %504 }
 0x19a   :  { %v779_v13 = vpop.eup %506  ;;  %162 = vrot.lane.b32.xlu1 %v776_v10, %s660_s1  ;;  %v342_v21 = vmul.f32 1.442695, %v339_v18 }
 0x19b   :  { %284 = vrot.lane.b32.xlu0 %v779_v13, %s664_s30  ;;  %v784_v16 = vpop.eup %508 }
 0x19c   :  { %v787_v19 = vpop.eup %510  ;;  %522 = vpow2.f32 %v342_v21 }
 0x19d   :  { %v792_v20 = vpop.eup %512  ;;  %524 = vpow2.f32 %v133_v27 }
 0x19e   :  { %193 = vrot.lane.b32.xlu1 %v784_v16, %s661_s2  ;;  %v794_v22 = vpop.eup %514  ;;  %526 = vpow2.f32 %v462_v38 }
 0x19f   :  { %315 = vrot.lane.b32.xlu0 %v787_v19, %s665_s5  ;;  %v799_v23 = vpop.eup %516  ;;  %528 = vpow2.f32 %v461_v39 }
 0x1a1   :  { %v802_v24 = vpop.eup %518 }
 0x1a2   :  { %224 = vrot.lane.b32.xlu1 %v792_v20, %s662_s28 }
 0x1a3   :  { %346 = vrot.lane.b32.xlu0 %v794_v22, %s666_s6 }
 0x1a5   :  { %v807_v26 = vpop.eup %520 }
 0x1a7   :  { %255 = vrot.lane.b32.xlu0 %v799_v23, %s663_s29 }
 0x1a9   :  { %v810_v28 = vpop.eup %522 }
 0x1aa   :  { %v813_v29 = vpop.eup %524 }
 0x1ab   :  { %286 = vrot.lane.b32.xlu0 %v802_v24, %s664_s30  ;;  %v138_v30 = vsel %vm122_vm3, %v813_v29, 0.0  ;;  %v527_v51 = vpop.eup %526 }
 0x1ac   :  { %v529_v53 = vpop.eup %528  ;;  %v396_v55 = vadd.f32 1.0, %v527_v51 }
 0x1ad   :  { %v395_v57 = vadd.f32 1.0, %v529_v53 }
 0x1ae   :  { %530 = vrcp.f32 %v396_v55 }
 0x1af   :  { %317 = vrot.lane.b32.xlu0 %v807_v26, %s665_s5  ;;  %532 = vrcp.f32 %v395_v57 }
 0x1b3   :  { %348 = vrot.lane.b32.xlu0 %v810_v28, %s666_s6 }
 0x1bb   :  { %v531_v58 = vpop.eup %530 }
 0x1bc   :  { %v533_v59 = vpop.eup %532 }
 0x1c6   :  { %139 = vadd.xlane.f32.xlu1 %v138_v30 }
 0x1fc   :  { %v161_v31 = vpop.permute.xlu0 %160 }
 0x1fd   :  { %v166_v32 = vsel %vm122_vm3, %v161_v31, 0.0 }
 0x1fe   :  { %167 = vadd.xlane.f32.xlu1 %v166_v32 }
 0x200   :  { %v192_v33 = vpop.permute.xlu0 %191 }
 0x201   :  { %v197_v34 = vsel %vm122_vm3, %v192_v33, 0.0 }
 0x202   :  { %198 = vadd.xlane.f32.xlu1 %v197_v34 }
 0x204   :  { %v223_v35 = vpop.permute.xlu0 %222 }
 0x205   :  { %v228_v36 = vsel %vm122_vm3, %v223_v35, 0.0 }
 0x206   :  { %229 = vadd.xlane.f32.xlu1 %v228_v36 }
 0x208   :  { %v254_v37 = vpop.permute.xlu0 %253 }
 0x209   :  { %v259_v49 = vsel %vm122_vm3, %v254_v37, 0.0 }
 0x20d   :  { %v285_v41 = vpop.permute.xlu0 %284 }
 0x20e   :  { %v290_v47 = vsel %vm122_vm3, %v285_v41, 0.0 }
 0x210   :  { %v137_v40 = vpop.xlane.xlu1 %136 }
 0x211   :  { %v316_v44 = vpop.permute.xlu0 %315 }
 0x212   :  { %v321_v50 = vsel %vm122_vm3, %v316_v44, 0.0 }
 0x214   :  { %v163_v42 = vpop.permute.xlu1 %162 }
 0x215   :  { %v169_v43 = vsel %vm122_vm3, %v163_v42, 0.0  ;;  %v347_v52 = vpop.permute.xlu0 %346 }
 0x216   :  { %170 = vadd.xlane.f32.xlu1 %v169_v43  ;;  %v352_v54 = vsel %vm122_vm3, %v347_v52, 0.0 }
 0x218   :  { %v194_v45 = vpop.permute.xlu1 %193 }
 0x219   :  { %v200_v46 = vsel %vm122_vm3, %v194_v45, 0.0  ;;  %v256_v60 = vpop.permute.xlu0 %255 }
 0x21a   :  { %201 = vadd.xlane.f32.xlu0 %v200_v46  ;;  %291 = vadd.xlane.f32.xlu1 %v290_v47  ;;  %v262_v1 = vsel %vm122_vm3, %v256_v60, 0.0 }
 0x21c   :  { %v225_v61 = vpop.permute.xlu1 %224 }
 0x21d   :  { %v231_v62 = vsel %vm122_vm3, %v225_v61, 0.0  ;;  %v287_v0 = vpop.permute.xlu0 %286 }
 0x21e   :  { %260 = vadd.xlane.f32.xlu0 %v259_v49  ;;  %322 = vadd.xlane.f32.xlu1 %v321_v50  ;;  %v293_v3 = vsel %vm122_vm3, %v287_v0, 0.0 }
 0x221   :  { %v318_v2 = vpop.permute.xlu0 %317 }
 0x222   :  { %353 = vadd.xlane.f32.xlu1 %v352_v54  ;;  %v324_v5 = vsel %vm122_vm3, %v318_v2, 0.0 }
 0x225   :  { %v349_v7 = vpop.permute.xlu0 %348 }
 0x226   :  { %v355_v8 = vsel %vm122_vm3, %v349_v7, 0.0 }
 0x233   :  { %405 = vrot.lane.b32.xlu1 %v531_v58, %s655_s18 }
 0x234   :  { %403 = vrot.lane.b32.xlu0 %v533_v59, %s655_s18 }
 0x237   :  { %411 = vrot.lane.b32.xlu1 %v710_v6, %s655_s18 }
 0x24f   :  { %v140_v6 = vpop.xlane.xlu1 %139 }
 0x250   :  { %534 = vrcp.f32 %v140_v6 }
 0x25b   :  { %232 = vadd.xlane.f32.xlu1 %v231_v62 }
 0x25d   :  { %v535_v31 = vpop.eup %534 }
 0x25e   :  { %v144_v35 = vmul.f32 %v535_v31, %v813_v29 }
 0x25f   :  { %263 = vadd.xlane.f32.xlu1 %v262_v1 }
 0x263   :  { %294 = vadd.xlane.f32.xlu1 %v293_v3 }
 0x267   :  { %325 = vadd.xlane.f32.xlu1 %v324_v5 }
 0x26b   :  { %356 = vadd.xlane.f32.xlu1 %v355_v8 }
 0x27c   :  { %413 = vrot.lane.b32.xlu1 %v720_v14, %s655_s18  ;;  %v385_v14 = vand.u32 127, %v384_v25 }
 0x27e   :  { %vm386_vm10 = vcmp.lt.s32.totalorder %v385_v14, 4  ;;  %vm387_vm11 = vcmp.ge.s32.totalorder %v385_v14, 20 }
 0x27f   :  { %vm842_vm12 = vmor %vm386_vm10, %vm387_vm11 }
 0x287   :  { %v168_v11 = vpop.xlane.xlu1 %167 }
 0x28b   :  { %v199_v12 = vpop.xlane.xlu1 %198 }
 0x28f   :  { %v230_v15 = vpop.xlane.xlu1 %229 }
 0x29f   :  { %v171_v17 = vpop.xlane.xlu1 %170 }
 0x2a0   :  { %536 = vrcp.f32 %v171_v17 }
 0x2a1   :  { %538 = vrcp.f32 %v137_v40 }
 0x2a2   :  { %540 = vrcp.f32 %v168_v11 }
 0x2a3   :  { %542 = vrcp.f32 %v199_v12  ;;  %v292_v18 = vpop.xlane.xlu1 %291  ;;  %v202_v21 = vpop.xlane.xlu0 %201 }
 0x2a4   :  { %544 = vrcp.f32 %v230_v15 }
 0x2a5   :  { %546 = vrcp.f32 %v202_v21 }
 0x2a6   :  { %548 = vrcp.f32 %v292_v18 }
 0x2a7   :  { %v323_v27 = vpop.xlane.xlu1 %322  ;;  %v261_v30 = vpop.xlane.xlu0 %260 }
 0x2a8   :  { %550 = vrcp.f32 %v323_v27 }
 0x2a9   :  { %552 = vrcp.f32 %v261_v30 }
 0x2ab   :  { %v354_v32 = vpop.xlane.xlu1 %353  ;;  %v404_v45 = vpop.permute.xlu0 %403 }
 0x2ac   :  { %554 = vrcp.f32 %v354_v32 }
 0x2ad   :  { %v537_v33 = vpop.eup %536 }
 0x2ae   :  { %v539_v34 = vpop.eup %538  ;;  %v175_v36 = vmul.f32 %v537_v33, %v776_v10 }
 0x2af   :  { %v541_v37 = vpop.eup %540  ;;  %v406_v38 = vpop.permute.xlu1 %405  ;;  %v142_v49 = vmul.f32 %v539_v34, %v750_v48 }
 0x2b0   :  { %v543_v39 = vpop.eup %542  ;;  %v363_v40 = vsel %vm122_vm3, %v144_v35, %v175_v36  ;;  %v173_v44 = vmul.f32 %v541_v37, %v757_v56 }
 0x2b1   :  { %v545_v41 = vpop.eup %544  ;;  %v204_v29 = vmul.f32 %v543_v39, %v763_v63 }
 0x2b2   :  { %v547_v43 = vpop.eup %546  ;;  %v235_v50 = vmul.f32 %v545_v41, %v768_v4  ;;  %v362_v63 = vsel %vm122_vm3, %v142_v49, %v173_v44  ;;  %vm381_vm3 = vcmask 523264  }
 0x2b3   :  { %v206_v10 = vmul.f32 %v547_v43, %v784_v16  ;;  %v412_v46 = vpop.permute.xlu1 %411  ;;  %v549_v47 = vpop.eup %548  ;;  %v365_v16 = vsel %vm364_vm14, %v362_v63, %v204_v29 }
 0x2b4   :  { %v417_v51 = vsel %vm842_vm12, %v404_v45, %v412_v46  ;;  %v368_v48 = vsel %vm367_vm15, %v365_v16, %v235_v50  ;;  %v297_v55 = vmul.f32 %v549_v47, %v779_v13 }
 0x2b5   :  { %v551_v52 = vpop.eup %550  ;;  %v366_v53 = vsel %vm364_vm14, %v363_v40, %v206_v10  ;;  %420 = vst.msk [vmem:[#allocation8] sm:$0xff] %vm419_vm13, %v417_v51 }
 0x2b6   :  { %v553_v56 = vpop.eup %552  ;;  %v328_v57 = vmul.f32 %v551_v52, %v787_v19 }
 0x2b7   :  { %v266_v54 = vmul.f32 %v553_v56, %v773_v9 }
 0x2b9   :  { %v555_v4 = vpop.eup %554  ;;  %v370_v58 = vsel %vm77_vm1, %v368_v48, %v266_v54 }
 0x2ba   :  { %v359_v59 = vmul.f32 %v555_v4, %v794_v22  ;;  %v373_v60 = vsel %vm372_vm0, %v370_v58, %v297_v55 }
 0x2bb   :  { %v376_v61 = vsel %vm375_vm2, %v373_v60, %v328_v57 }
 0x2bc   :  { %v379_v9 = vsel %vm378_vm4, %v376_v61, %v359_v59 }
 0x2bd   :  { %382 = vst.msk [vmem:[#allocation7] sm:$0xff] %vm381_vm3, %v379_v9 }
 0x2e4   :  { %v233_v62 = vpop.xlane.xlu1 %232 }
 0x2e5   :  { %556 = vrcp.f32 %v233_v62 }
 0x2e8   :  { %v264_v13 = vpop.xlane.xlu1 %263 }
 0x2e9   :  { %558 = vrcp.f32 %v264_v13 }
 0x2ec   :  { %v295_v0 = vpop.xlane.xlu1 %294 }
 0x2ed   :  { %560 = vrcp.f32 %v295_v0 }
 0x2f0   :  { %v326_v19 = vpop.xlane.xlu1 %325 }
 0x2f1   :  { %562 = vrcp.f32 %v326_v19 }
 0x2f2   :  { %v557_v3 = vpop.eup %556 }
 0x2f4   :  { %v357_v1 = vpop.xlane.xlu1 %356 }
 0x2f5   :  { %564 = vrcp.f32 %v357_v1 }
 0x2f6   :  { %v559_v5 = vpop.eup %558 }
 0x2f8   :  { %v414_v22 = vpop.permute.xlu1 %413 }
 0x2f9   :  { %v418_v2 = vsel %vm842_vm12, %v406_v38, %v414_v22 }
 0x2fa   :  { %421 = vst.msk [vmem:[#allocation8 + $0x8] sm:$0xff] %vm419_vm13, %v418_v2 }
 0x2fb   :  { %617 = shalt.err (!%p614_p0)
}
 0x2fc   :  { %s668_s10 = smov 128   ;;  %s669_s11 = smov 8   ;;  %v561_v7 = vpop.eup %560  ;;  %v237_v8 = vmul.f32 %v557_v3, %v792_v20  ;;  %v268_v11 = vmul.f32 %v559_v5, %v799_v23 }
 0x2fd   :  { %445 = dma.vmem_to_hbm [thread:$0]  %s440_s8, 256, %s895_s4, [#allocation9], %s668_s10, %s668_s10, %s669_s11   ;;  %v299_v12 = vmul.f32 %v561_v7, %v802_v24 }
 0x2fe   :  { %v563_v6 = vpop.eup %562  ;;  %v369_v17 = vsel %vm367_vm15, %v366_v53, %v237_v8  ;;  %s670_s14 = smov [#allocation7]  }
 0x2ff   :  { %v330_v15 = vmul.f32 %v563_v6, %v807_v26  ;;  %s427_s15 = sshll.u32 %s670_s14, 4  ;;  %v371_v21 = vsel %vm77_vm1, %v369_v17, %v268_v11  ;;  %s428_s15 = int_to_ptr.vmem [resolvable:$true] %s427_s15 }
 0x300   :  { %v374_v27 = vsel %vm372_vm0, %v371_v21, %v299_v12  ;;  %s626_s4 = scalar_lea.vmem %s428_s15, 256  ;;  %p631_p2 = scmp.lt.s32.totalorder %s428_s15, %s428_s15 }
 0x301   :  { %v377_v20 = vsel %vm375_vm2, %v374_v27, %v330_v15  ;;  %p627_p1 = scmp.ne.s32.totalorder %s428_s15, %s626_s4  ;;  %p632_p3 = scmp.lt.s32.totalorder %s626_s4, %s626_s4 }
 0x302   :  { %v565_v18 = vpop.eup %564 }
 0x303   :  { %v361_v25 = vmul.f32 %v565_v18, %v810_v28  ;;  %p633_p4 = por %p632_p3, %p631_p2 }
 0x305   :  { %v380_v23 = vsel %vm378_vm4, %v377_v20, %v361_v25  ;;  %p634_p5 = pnand %p633_p4, %p627_p1 }
 0x306   :  { %383 = vst.msk [vmem:[#allocation7 + $0x8] sm:$0xff] %vm381_vm3, %v380_v23 }
 0x307   :  { %637 = shalt.err (!%p634_p5)
}
 0x308   :  { %433 = dma.vmem_to_hbm [thread:$0]  %s428_s15, 256, %s894_s3, [#allocation4], %s668_s10, %s668_s10, %s669_s11  }
 0x309   :  { %650 = dma.done.wait [#allocation4], 256  }
 0x30a   :  { %651 = vsyncadd [#allocation4], 4294967040 }
 0x30b   :  { %652 = dma.done.wait [#allocation9], 256  }
 0x30c   :  { %653 = vsyncadd [#allocation9], 4294967040 }
 0x30d   :  { %452 = vsyncpa [#allocation3], 1 }
 0x30e   :  { %453 = vsyncpa [#allocation6], 1 }
 0x30f   :  { %454 = vsyncpa [#allocation4], 1 }
 0x310   :  { %455 = vsyncpa [#allocation9], 1 }

</bundles_post_ra>
